<compile_context>
chip_gen: v6e
topology: v6e:2x2x1
jax: 0.10.0
libtpu: 0.0.40
codegen_flags: <defaults>
</compile_context>

<pallas_src>
import functools

import jax
import jax.numpy as jnp
from jax import lax
from jax.experimental import pallas as pl
from jax.experimental.pallas import tpu as pltpu

# Config (deterministic, mirrors detectron2 ROI_HEADS defaults)
NUM_CLASSES = 3
IOU_LOW = 0.5          # ROI_HEADS.IOU_THRESHOLDS = [0.5]
IOU_HIGH = 0.5         # single threshold -> labels {0, 1}, no -1 band

_PACK = 8              # power of two > NUM_CLASSES + 1: class packs in low bits
_PACK_SHIFT = 3
# packed output layout (single int32 per proposal):
#   bits [0:4)  = assigned_class + 1   (0 .. NUM_CLASSES+1; needs NUM_CLASSES<=14)
#   bits [4:6)  = matched_label + 1    (0, 1, 2)
#   bits [6:..) = matched_gt_index
_CLS_BITS = 4
_LBL_BITS = 2
_IDX_SHIFT = _CLS_BITS + _LBL_BITS
assert NUM_CLASSES + 1 < _PACK
assert NUM_CLASSES + 1 < (1 << _CLS_BITS)

# TODO(synk): subsample_labels (torch.randperm-driven fg/bg sampling) and the
# Instances / gt_* field bookkeeping (add_ground_truth_to_proposals, gt_sames
# assembly, field renames) have no deterministic Pallas equivalent; they stay
# on the host. This kernel labels *all* proposals (superset of the sample).


def roi_match_kernel(gt_ref, prop_t_ref, out_ref):
    """One (image, proposal-tile) grid step.

    gt_ref     : (M_pad, 8) f32  cols 0..3 = GT box, col 4 = class (-1 = pad)
    prop_t_ref : (4, TN)    f32  proposal boxes, proposals on the lane axis
    out_ref    : (1, TN)    i32  packed (matched_idx, label+1, class+1)
    """
    m_pad = gt_ref.shape[0]

    # GT-side terms are (M_pad, 1) — a couple of vregs.  The GT block index is
    # constant across proposal tiles, so it is not re-DMA'd; recomputing these
    # tiny slices per tile is negligible.
    gt = gt_ref[...]                                        # (M, 8)
    gx1 = gt[:, 0:1]; gy1 = gt[:, 1:2]
    gx2 = gt[:, 2:3]; gy2 = gt[:, 3:4]
    gtc = gt[:, 4:5].astype(jnp.int32)                      # (M, 1) class
    valid = gtc >= 0                                        # (M, 1) pad mask
    area_g = (gx2 - gx1) * (gy2 - gy1)                      # (M, 1)

    p = prop_t_ref[...]                                     # (4, TN)
    px1 = p[0:1, :]; py1 = p[1:2, :]
    px2 = p[2:3, :]; py2 = p[3:4, :]
    area_p = (px2 - px1) * (py2 - py1)                      # (1, TN)

    # detectron2 pairwise_iou semantics: IoU = inter/union, 0 where inter == 0.
    # inter > 0 implies both boxes have positive extent, hence union > 0, so
    # no extra union guard is needed; the pad-row mask is folded into inter.
    iw = jnp.maximum(jnp.minimum(gx2, px2) - jnp.maximum(gx1, px1), 0.0)
    ih = jnp.maximum(jnp.minimum(gy2, py2) - jnp.maximum(gy1, py1), 0.0)
    inter = jnp.where(valid, iw * ih, 0.0)                  # (M, TN)
    union = area_g + area_p - inter
    inv = pl.reciprocal(union, approx=True)                 # EUP slot
    inv = inv * (2.0 - union * inv)                         # 1 NR step -> ~exact
    iou = jnp.where(inter > 0.0, inter * inv, 0.0)

    # Matcher: max over the GT (sublane) axis.
    matched_vals = jnp.max(iou, axis=0, keepdims=True)      # (1, TN)

    # Fused argmin + class gather: the per-row key (gt_row, gt_class+1) is only
    # (M, 1); the select against the (M, TN) max-equality mask broadcasts it.
    # Row index occupies the high bits, so ties at the max IoU still resolve to
    # the smallest GT index (Matcher semantics).  Pad rows get `big`.
    m_iota = lax.broadcasted_iota(jnp.int32, (m_pad, 1), 0)
    big = jnp.int32(m_pad * _PACK)
    key = jnp.where(valid, m_iota * _PACK + (gtc + 1), big)  # (M, 1)
    cand = jnp.where(iou == matched_vals, key, big)          # (M, TN)
    best = jnp.min(cand, axis=0, keepdims=True)              # (1, TN)

    has_match = best < big                     # False only if no valid GT
    matched_idxs = jnp.where(has_match, best >> _PACK_SHIFT, jnp.int32(0))
    gathered_cls = jnp.where(has_match, (best & (_PACK - 1)) - 1, jnp.int32(0))

    # IoU labels: < low -> 0 (bg), [low, high) -> -1 (ignore), >= high -> 1 (fg)
    lbl = jnp.where(matched_vals >= IOU_HIGH, jnp.int32(1),
                    jnp.where(matched_vals >= IOU_LOW, jnp.int32(-1),
                              jnp.int32(0)))

    # _sample_proposals class assignment.  With no valid GT, matched_vals == 0
    # -> lbl == 0 -> class == NUM_CLASSES, matched_idxs == 0 (detectron2 path).
    assigned = jnp.where(lbl == 0, jnp.int32(NUM_CLASSES), gathered_cls)
    assigned = jnp.where(lbl == -1, jnp.int32(-1), assigned)

    out_ref[...] = ((matched_idxs << _IDX_SHIFT)
                    | ((lbl + 1) << _CLS_BITS)
                    | (assigned + 1)).astype(jnp.int32)


def _pad_rows(x, target, value):
    pad = target - x.shape[1]
    if pad == 0:
        return x
    widths = [(0, 0)] * x.ndim
    widths[1] = (0, pad)
    return jnp.pad(x, widths, constant_values=value)


def _pick_tile(n_pad, batch, tn_max):
    """Widest multiple of 128 that divides n_pad and is <= tn_max; when
    batch == 1 force >= 2 grid steps so both v7x TensorCores get work."""
    cap = min(tn_max, n_pad)
    if batch == 1 and n_pad >= 256:
        cap = min(cap, n_pad // 2)
    best = 128
    t = 128
    while t <= cap:
        if n_pad % t == 0:
            best = t
        t += 128
    return best


@functools.partial(jax.jit, static_argnames=("tn",))
def roi_heads_label_proposals(gt_boxes, gt_classes, prop_boxes, *, tn=1024):
    """Batched proposal labelling (pairwise_iou + Matcher + class assignment).

    gt_boxes   : (B, M, 4) f32  per-image GT boxes (rows with class -1 ignored)
    gt_classes : (B, M)    i32  per-image GT classes; -1 marks invalid/pad rows
    prop_boxes : (B, N, 4) f32  proposal boxes (a pre-transposed (B, 4, N)
                                coordinate-major layout is also accepted)
    Returns (matched_idxs, matched_labels, assigned_classes), each (B, N) i32.
    """
    B, M = gt_boxes.shape[:2]

    if prop_boxes.ndim == 3 and prop_boxes.shape[1] == 4 and prop_boxes.shape[2] != 4:
        prop_t = prop_boxes.astype(jnp.float32)            # already (B, 4, N)
    else:
        prop_t = jnp.transpose(prop_boxes.astype(jnp.float32), (0, 2, 1))
    N = prop_t.shape[2]

    # GT boxes + classes merged into one small (B, m_pad, 8) f32 operand; pad
    # rows carry class -1 so the kernel masks them (covers M == 0 / no-GT too).
    m_pad = max(8, ((M + 7) // 8) * 8)
    gt_packed = jnp.concatenate(
        [gt_boxes.astype(jnp.float32),
         gt_classes.astype(jnp.float32)[..., None],
         jnp.zeros((B, M, 3), jnp.float32)], axis=-1)
    gt_packed = _pad_rows(gt_packed, m_pad, -1.0)

    # Pad proposals only to a lane multiple (128), then pick the widest tile
    # that divides the padded N (low DMA waste, few grid steps).
    n_pad = ((N + 127) // 128) * 128
    if n_pad > N:
        prop_t = jnp.pad(prop_t, ((0, 0), (0, 0), (0, n_pad - N)))
    tile_n = _pick_tile(n_pad, B, tn)

    out = pl.pallas_call(
        roi_match_kernel,
        out_shape=jax.ShapeDtypeStruct((B, 1, n_pad), jnp.int32),
        grid_spec=pltpu.PrefetchScalarGridSpec(
            num_scalar_prefetch=0,
            grid=(B, n_pad // tile_n),
            in_specs=[
                pl.BlockSpec((None, m_pad, 8), lambda b, j: (b, 0, 0)),
                pl.BlockSpec((None, 4, tile_n), lambda b, j: (b, 0, j)),
            ],
            out_specs=pl.BlockSpec((None, 1, tile_n), lambda b, j: (b, 0, j)),
        ),
        compiler_params=pltpu.CompilerParams(
            dimension_semantics=("parallel", "parallel"),
            # Let XLA fuse the pad/transpose into the proposal operand instead
            # of materializing it as a separate HBM-rewriting kernel.
            allow_input_fusion=[False, True]),
    )(gt_packed, prop_t)

    packed = out[:, 0, :N]                                  # (B, N) i32
    matched_idxs = packed >> _IDX_SHIFT
    matched_labels = ((packed >> _CLS_BITS) & ((1 << _LBL_BITS) - 1)) - 1
    assigned = (packed & ((1 << _CLS_BITS) - 1)) - 1
    return matched_idxs, matched_labels, assigned


def _make_boxes(key, shape, scale=64.0):
    k1, k2 = jax.random.split(key)
    xy = jax.random.uniform(k1, shape + (2,), jnp.float32, 0.0, scale)
    wh = jax.random.uniform(k2, shape + (2,), jnp.float32, 4.0, scale / 2)
    return jnp.concatenate([xy, xy + wh], axis=-1)   # x1 y1 x2 y2


def _reference(gt_b, gtc_b, prop_b):
    """Exact (full-precision) pairwise_iou + Matcher + class assignment."""
    M = gt_b.shape[0]
    g = gt_b[:, None, :]; p = prop_b[None, :, :]
    iw = jnp.maximum(jnp.minimum(g[..., 2], p[..., 2]) -
                     jnp.maximum(g[..., 0], p[..., 0]), 0.0)
    ih = jnp.maximum(jnp.minimum(g[..., 3], p[..., 3]) -
                     jnp.maximum(g[..., 1], p[..., 1]), 0.0)
    inter = iw * ih
    ag = (gt_b[:, 2] - gt_b[:, 0]) * (gt_b[:, 3] - gt_b[:, 1])
    ap = (prop_b[:, 2] - prop_b[:, 0]) * (prop_b[:, 3] - prop_b[:, 1])
    union = ag[:, None] + ap[None, :] - inter
    iou = jnp.where(inter > 0, inter / union, 0.0)
    mv = iou.max(axis=0)
    mi = jnp.argmin(jnp.where(iou == mv[None, :],
                              jnp.arange(M)[:, None], M), axis=0)
    lbl = jnp.where(mv >= IOU_HIGH, 1, jnp.where(mv >= IOU_LOW, -1, 0))
    cls = gtc_b[mi]
    cls = jnp.where(lbl == 0, NUM_CLASSES, cls)
    cls = jnp.where(lbl == -1, -1, cls)
    return iou, mv, mi, lbl, cls


if __name__ == "__main__":
    key = jax.random.PRNGKey(0)
    kg, kp, kc, kjunk = jax.random.split(key, 4)

    B, M_max, N = 2, 6, 1024
    valid_counts = [6, 4]                       # ragged per-image GT counts
    gt_boxes = _make_boxes(kg, (B, M_max))
    prop_boxes = _make_boxes(kp, (B, N))
    gt_classes = jax.random.randint(kc, (B, M_max), 0, NUM_CLASSES, jnp.int32)

    # Mark invalid GT rows with class -1 and *garbage* boxes: the kernel must
    # mask them out of the match.
    row = jnp.arange(M_max)[None, :]
    valid = row < jnp.asarray(valid_counts)[:, None]
    gt_classes = jnp.where(valid, gt_classes, -1)
    junk = _make_boxes(kjunk, (B, M_max), scale=128.0)
    gt_boxes = jnp.where(valid[..., None], gt_boxes, junk)

    midx, mlbl, mcls = jax.block_until_ready(
        roi_heads_label_proposals(gt_boxes, gt_classes, prop_boxes))

    # Exact pure-JAX cross-check.  The kernel uses a Newton-refined approx
    # reciprocal (~1 ulp), so disagreement is only tolerated within `tol` of a
    # threshold or an IoU tie; everything else must match exactly.
    tol = 1e-4
    for b in range(B):
        mv_real = valid_counts[b]
        iou_r, mv, mi_r, lbl_r, cls_r = _reference(
            gt_boxes[b, :mv_real], gt_classes[b, :mv_real], prop_boxes[b])
        near_thr = jnp.abs(mv - IOU_LOW) < tol
        near_tie = jnp.sum(iou_r >= mv[None, :] - tol, axis=0) > 1
        chosen = jnp.take_along_axis(iou_r, midx[b][None, :], axis=0)[0]
        assert bool(jnp.all(midx[b] < mv_real))            # never a pad row
        assert bool(jnp.all(chosen >= mv - tol))           # chosen GT is a best match
        assert bool(jnp.all((midx[b] == mi_r) | near_tie))
        assert bool(jnp.all((mlbl[b] == lbl_r) | near_thr))
        assert bool(jnp.all((mcls[b] == cls_r) | near_thr | near_tie))

    print("KERNEL_OK")
</pallas_src>

<mosaic_0001>
module attributes {stable_mosaic.version = 11 : i64} {
  func.func @roi_match_kernel(%arg0: i32, %arg1: i32, %arg2: memref<1x8x8xf32, #tpu.memory_space<vmem>>, %arg3: memref<1x4x1024xf32, #tpu.memory_space<vmem>>, %arg4: memref<1x1x1024xi32, #tpu.memory_space<vmem>>) attributes {dimension_semantics = [#tpu.dimension_semantics<parallel>, #tpu.dimension_semantics<parallel>], iteration_bounds = array<i64: 2, 1>, scalar_prefetch = 0 : i64, scratch_operands = 0 : i64, tpu.core_type = #tpu.core_type<tc>, window_params = [{transform_indices = @transform_0, window_bounds = array<i64: 1, 8, 8>}, {transform_indices = @transform_1, window_bounds = array<i64: 1, 4, 1024>}, {transform_indices = @transform_2, window_bounds = array<i64: 1, 1, 1024>}]} {
    %c0 = arith.constant 0 : index
    %c0_0 = arith.constant 0 : index
    %c0_1 = arith.constant 0 : index
    %0 = vector.load %arg2[%c0, %c0_0, %c0_1] : memref<1x8x8xf32, #tpu.memory_space<vmem>>, vector<1x8x8xf32>
    %1 = vector.shape_cast %0 : vector<1x8x8xf32> to vector<8x8xf32>
    %2 = vector.extract_strided_slice %1 {offsets = [0, 0], sizes = [8, 1], strides = [1, 1]} : vector<8x8xf32> to vector<8x1xf32>
    %3 = vector.extract_strided_slice %1 {offsets = [0, 1], sizes = [8, 1], strides = [1, 1]} : vector<8x8xf32> to vector<8x1xf32>
    %4 = vector.extract_strided_slice %1 {offsets = [0, 2], sizes = [8, 1], strides = [1, 1]} : vector<8x8xf32> to vector<8x1xf32>
    %5 = vector.extract_strided_slice %1 {offsets = [0, 3], sizes = [8, 1], strides = [1, 1]} : vector<8x8xf32> to vector<8x1xf32>
    %6 = vector.extract_strided_slice %1 {offsets = [0, 4], sizes = [8, 1], strides = [1, 1]} : vector<8x8xf32> to vector<8x1xf32>
    %7 = arith.fptosi %6 : vector<8x1xf32> to vector<8x1xi32>
    %c0_i32 = arith.constant 0 : i32
    %8 = vector.broadcast %c0_i32 : i32 to vector<8x1xi32>
    %9 = arith.cmpi sge, %7, %8 : vector<8x1xi32>
    %10 = arith.subf %4, %2 : vector<8x1xf32>
    %11 = arith.subf %5, %3 : vector<8x1xf32>
    %12 = arith.mulf %10, %11 : vector<8x1xf32>
    %c0_2 = arith.constant 0 : index
    %c0_3 = arith.constant 0 : index
    %c0_4 = arith.constant 0 : index
    %13 = vector.load %arg3[%c0_2, %c0_3, %c0_4] : memref<1x4x1024xf32, #tpu.memory_space<vmem>>, vector<1x4x1024xf32>
    %14 = vector.shape_cast %13 : vector<1x4x1024xf32> to vector<4x1024xf32>
    %15 = vector.extract_strided_slice %14 {offsets = [0, 0], sizes = [1, 1024], strides = [1, 1]} : vector<4x1024xf32> to vector<1x1024xf32>
    %16 = vector.extract_strided_slice %14 {offsets = [1, 0], sizes = [1, 1024], strides = [1, 1]} : vector<4x1024xf32> to vector<1x1024xf32>
    %17 = vector.extract_strided_slice %14 {offsets = [2, 0], sizes = [1, 1024], strides = [1, 1]} : vector<4x1024xf32> to vector<1x1024xf32>
    %18 = vector.extract_strided_slice %14 {offsets = [3, 0], sizes = [1, 1024], strides = [1, 1]} : vector<4x1024xf32> to vector<1x1024xf32>
    %19 = arith.subf %17, %15 : vector<1x1024xf32>
    %20 = arith.subf %18, %16 : vector<1x1024xf32>
    %21 = arith.mulf %19, %20 : vector<1x1024xf32>
    %22 = vector.broadcast %4 : vector<8x1xf32> to vector<8x1024xf32>
    %23 = vector.broadcast %17 : vector<1x1024xf32> to vector<8x1024xf32>
    %24 = arith.minimumf %22, %23 : vector<8x1024xf32>
    %25 = vector.broadcast %2 : vector<8x1xf32> to vector<8x1024xf32>
    %26 = vector.broadcast %15 : vector<1x1024xf32> to vector<8x1024xf32>
    %27 = arith.maximumf %25, %26 : vector<8x1024xf32>
    %28 = arith.subf %24, %27 : vector<8x1024xf32>
    %cst = arith.constant 0.000000e+00 : f32
    %29 = vector.broadcast %cst : f32 to vector<8x1024xf32>
    %30 = arith.maximumf %28, %29 : vector<8x1024xf32>
    %31 = vector.broadcast %5 : vector<8x1xf32> to vector<8x1024xf32>
    %32 = vector.broadcast %18 : vector<1x1024xf32> to vector<8x1024xf32>
    %33 = arith.minimumf %31, %32 : vector<8x1024xf32>
    %34 = vector.broadcast %3 : vector<8x1xf32> to vector<8x1024xf32>
    %35 = vector.broadcast %16 : vector<1x1024xf32> to vector<8x1024xf32>
    %36 = arith.maximumf %34, %35 : vector<8x1024xf32>
    %37 = arith.subf %33, %36 : vector<8x1024xf32>
    %cst_5 = arith.constant 0.000000e+00 : f32
    %38 = vector.broadcast %cst_5 : f32 to vector<8x1024xf32>
    %39 = arith.maximumf %37, %38 : vector<8x1024xf32>
    %40 = arith.mulf %30, %39 : vector<8x1024xf32>
    %cst_6 = arith.constant 0.000000e+00 : f32
    %41 = vector.shape_cast %9 : vector<8x1xi1> to vector<8x1xi1>
    %42 = vector.broadcast %41 : vector<8x1xi1> to vector<8x1024xi1>
    %43 = vector.broadcast %cst_6 : f32 to vector<8x1024xf32>
    %44 = arith.select %42, %40, %43 : vector<8x1024xi1>, vector<8x1024xf32>
    %45 = vector.broadcast %12 : vector<8x1xf32> to vector<8x1024xf32>
    %46 = vector.broadcast %21 : vector<1x1024xf32> to vector<8x1024xf32>
    %47 = arith.addf %45, %46 : vector<8x1024xf32>
    %48 = arith.subf %47, %44 : vector<8x1024xf32>
    %49 = tpu.reciprocal %48 {approx = true} : vector<8x1024xf32> -> vector<8x1024xf32>
    %50 = arith.mulf %48, %49 : vector<8x1024xf32>
    %cst_7 = arith.constant 2.000000e+00 : f32
    %51 = vector.broadcast %cst_7 : f32 to vector<8x1024xf32>
    %52 = arith.subf %51, %50 : vector<8x1024xf32>
    %53 = arith.mulf %49, %52 : vector<8x1024xf32>
    %cst_8 = arith.constant 0.000000e+00 : f32
    %54 = vector.broadcast %cst_8 : f32 to vector<8x1024xf32>
    %55 = arith.cmpf ogt, %44, %54 : vector<8x1024xf32>
    %56 = arith.mulf %44, %53 : vector<8x1024xf32>
    %cst_9 = arith.constant 0.000000e+00 : f32
    %57 = vector.broadcast %cst_9 : f32 to vector<8x1024xf32>
    %58 = arith.select %55, %56, %57 : vector<8x1024xi1>, vector<8x1024xf32>
    %cst_10 = arith.constant dense<0xFF800000> : vector<1024xf32>
    %59 = vector.multi_reduction <maximumf>, %58, %cst_10 [0] : vector<8x1024xf32> to vector<1024xf32>
    %60 = vector.shape_cast %59 : vector<1024xf32> to vector<1x1024xf32>
    %61 = tpu.iota {dimensions = array<i32: 0>} : vector<8x1xi32>
    %c8_i32 = arith.constant 8 : i32
    %62 = vector.broadcast %c8_i32 : i32 to vector<8x1xi32>
    %63 = arith.muli %61, %62 : vector<8x1xi32>
    %c1_i32 = arith.constant 1 : i32
    %64 = vector.broadcast %c1_i32 : i32 to vector<8x1xi32>
    %65 = arith.addi %7, %64 : vector<8x1xi32>
    %66 = arith.addi %63, %65 : vector<8x1xi32>
    %c64_i32 = arith.constant 64 : i32
    %67 = vector.broadcast %c64_i32 : i32 to vector<8x1xi32>
    %68 = arith.select %9, %66, %67 : vector<8x1xi1>, vector<8x1xi32>
    %69 = vector.broadcast %60 : vector<1x1024xf32> to vector<8x1024xf32>
    %70 = arith.cmpf oeq, %58, %69 : vector<8x1024xf32>
    %c64_i32_11 = arith.constant 64 : i32
    %71 = vector.shape_cast %68 : vector<8x1xi32> to vector<8x1xi32>
    %72 = vector.broadcast %71 : vector<8x1xi32> to vector<8x1024xi32>
    %73 = vector.broadcast %c64_i32_11 : i32 to vector<8x1024xi32>
    %74 = arith.select %70, %72, %73 : vector<8x1024xi1>, vector<8x1024xi32>
    %cst_12 = arith.constant dense<2147483647> : vector<1024xi32>
    %75 = vector.multi_reduction <minsi>, %74, %cst_12 [0] : vector<8x1024xi32> to vector<1024xi32>
    %76 = vector.shape_cast %75 : vector<1024xi32> to vector<1x1024xi32>
    %c64_i32_13 = arith.constant 64 : i32
    %77 = vector.broadcast %c64_i32_13 : i32 to vector<1x1024xi32>
    %78 = arith.cmpi slt, %76, %77 : vector<1x1024xi32>
    %c3_i32 = arith.constant 3 : i32
    %79 = vector.broadcast %c3_i32 : i32 to vector<1x1024xi32>
    %80 = arith.shrsi %76, %79 : vector<1x1024xi32>
    %c0_i32_14 = arith.constant 0 : i32
    %81 = vector.broadcast %c0_i32_14 : i32 to vector<1x1024xi32>
    %82 = arith.select %78, %80, %81 : vector<1x1024xi1>, vector<1x1024xi32>
    %c7_i32 = arith.constant 7 : i32
    %83 = vector.broadcast %c7_i32 : i32 to vector<1x1024xi32>
    %84 = arith.andi %76, %83 : vector<1x1024xi32>
    %c1_i32_15 = arith.constant 1 : i32
    %85 = vector.broadcast %c1_i32_15 : i32 to vector<1x1024xi32>
    %86 = arith.subi %84, %85 : vector<1x1024xi32>
    %c0_i32_16 = arith.constant 0 : i32
    %87 = vector.broadcast %c0_i32_16 : i32 to vector<1x1024xi32>
    %88 = arith.select %78, %86, %87 : vector<1x1024xi1>, vector<1x1024xi32>
    %cst_17 = arith.constant 5.000000e-01 : f32
    %89 = vector.broadcast %cst_17 : f32 to vector<1x1024xf32>
    %90 = arith.cmpf oge, %60, %89 : vector<1x1024xf32>
    %cst_18 = arith.constant 5.000000e-01 : f32
    %91 = vector.broadcast %cst_18 : f32 to vector<1x1024xf32>
    %92 = arith.cmpf oge, %60, %91 : vector<1x1024xf32>
    %c-1_i32 = arith.constant -1 : i32
    %c0_i32_19 = arith.constant 0 : i32
    %93 = vector.broadcast %c-1_i32 : i32 to vector<1x1024xi32>
    %94 = vector.broadcast %c0_i32_19 : i32 to vector<1x1024xi32>
    %95 = arith.select %92, %93, %94 : vector<1x1024xi1>, vector<1x1024xi32>
    %c1_i32_20 = arith.constant 1 : i32
    %96 = vector.broadcast %c1_i32_20 : i32 to vector<1x1024xi32>
    %97 = arith.select %90, %96, %95 : vector<1x1024xi1>, vector<1x1024xi32>
    %c0_i32_21 = arith.constant 0 : i32
    %98 = vector.broadcast %c0_i32_21 : i32 to vector<1x1024xi32>
    %99 = arith.cmpi eq, %97, %98 : vector<1x1024xi32>
    %c3_i32_22 = arith.constant 3 : i32
    %100 = vector.broadcast %c3_i32_22 : i32 to vector<1x1024xi32>
    %101 = arith.select %99, %100, %88 : vector<1x1024xi1>, vector<1x1024xi32>
    %c-1_i32_23 = arith.constant -1 : i32
    %102 = vector.broadcast %c-1_i32_23 : i32 to vector<1x1024xi32>
    %103 = arith.cmpi eq, %97, %102 : vector<1x1024xi32>
    %c-1_i32_24 = arith.constant -1 : i32
    %104 = vector.broadcast %c-1_i32_24 : i32 to vector<1x1024xi32>
    %105 = arith.select %103, %104, %101 : vector<1x1024xi1>, vector<1x1024xi32>
    %c6_i32 = arith.constant 6 : i32
    %106 = vector.broadcast %c6_i32 : i32 to vector<1x1024xi32>
    %107 = arith.shli %82, %106 : vector<1x1024xi32>
    %c1_i32_25 = arith.constant 1 : i32
    %108 = vector.broadcast %c1_i32_25 : i32 to vector<1x1024xi32>
    %109 = arith.addi %97, %108 : vector<1x1024xi32>
    %c4_i32 = arith.constant 4 : i32
    %110 = vector.broadcast %c4_i32 : i32 to vector<1x1024xi32>
    %111 = arith.shli %109, %110 : vector<1x1024xi32>
    %112 = arith.ori %107, %111 : vector<1x1024xi32>
    %c1_i32_26 = arith.constant 1 : i32
    %113 = vector.broadcast %c1_i32_26 : i32 to vector<1x1024xi32>
    %114 = arith.addi %105, %113 : vector<1x1024xi32>
    %115 = arith.ori %112, %114 : vector<1x1024xi32>
    %c0_27 = arith.constant 0 : index
    %c0_28 = arith.constant 0 : index
    %c0_29 = arith.constant 0 : index
    %116 = vector.load %arg4[%c0_27, %c0_28, %c0_29] : memref<1x1x1024xi32, #tpu.memory_space<vmem>>, vector<1x1x1024xi32>
    %117 = vector.shape_cast %116 : vector<1x1x1024xi32> to vector<1x1024xi32>
    %118 = vector.shape_cast %115 : vector<1x1024xi32> to vector<1x1x1024xi32>
    tpu.vector_store %arg4[%c0_27, %c0_28, %c0_29], %118 {strides = array<i32>} : memref<1x1x1024xi32, #tpu.memory_space<vmem>>, vector<1x1x1024xi32>,
    return
  }
  func.func @transform_0(%arg0: i32, %arg1: i32) -> (i32, i32, i32) {
    %c0_i32 = arith.constant 0 : i32
    %c0_i32_0 = arith.constant 0 : i32
    %c0_i32_1 = arith.constant 0 : i32
    return %arg0, %c0_i32, %c0_i32_0 : i32, i32, i32
  }
  func.func @transform_1(%arg0: i32, %arg1: i32) -> (i32, i32, i32) {
    %c0_i32 = arith.constant 0 : i32
    %c0_i32_0 = arith.constant 0 : i32
    return %arg0, %c0_i32, %arg1 : i32, i32, i32
  }
  func.func @transform_2(%arg0: i32, %arg1: i32) -> (i32, i32, i32) {
    %c0_i32 = arith.constant 0 : i32
    %c0_i32_0 = arith.constant 0 : i32
    return %arg0, %c0_i32, %arg1 : i32, i32, i32
  }
}

</mosaic_0001>

<bundles_post_ra>
// kernel: roi_heads_label_proposals.2
= control target key start
LH: loop header
LB: loop body
LE: loop exit
PB: predicated region body
PF: predicated region fallthrough
CT: control target
= control target key end

     0   :  { %s1422_s9 = smov 0   ;;  %s1424_s10 = smov 0   ;;  %s2066_s0 = inlined_call_operand.vmem [shape: f32[2,8,8], index: 0, kind: input, shape index: {}]   ;;  %s2067_s1 = inlined_call_operand.vmem [shape: f32[2,1024,4], index: 1, kind: input, shape index: {}]   ;;  %s2068_s2 = inlined_call_operand.vmem [shape: s32[2,1,1024], index: 2, kind: output, shape index: {}]  }
   0x1   :  { %s1426_s11 = smov 0  }
   0x2 LB: > { %s24_s12 = sadd.s32 1, %s1393_s10  ;;  %p1275_p0 = scmp.ge.s32.totalorder %s1397_s11, 1  ;;  %s1397_s11 = sphi %s1426_s11, %s12_s11   ;;  %s1393_s10 = sphi %s1424_s10, %s2097_s10   ;;  %s1389_s9 = sphi %s1422_s9, %s2096_s9  }
   0x3   : > { %p26_p1 = scmp.ge.s32.totalorder %s24_s12, 2  ;;  %p142_p2 = scmp.lt.s32.totalorder %s1397_s11, 3 }
   0x5   : > { %s2099_s12 = smov (%p26_p1, %s24_s12), 0  ;;  %p143_p3 = pnand %p1275_p0, %p142_p2 }
   0x7   : > { %146 = sbr.rel (%p143_p3) target bundleno = 490 (0x1ea), region = 28 }
   0xc   : > { %p175_p4 = scmp.lt.s32.totalorder %s1389_s9, 1  ;;  %v1399_v0 = vmov 2   ;;  %v1400_v1 = vmov 3   ;;  %s1401_s21 = smov 2   ;;  %v1402_v8 = vmov 0   ;;  %v1403_v10 = vmov 1  }
   0xd   : > { %1352 = vset.pattern.permute.xlu1 %v1399_v0  ;;  %1354 = vset.pattern.permute.xlu0 %v1400_v1  ;;  %v1404_v12 = vmov 4   ;;  %v301_v13 = vlaneseq  ;;  %s1405_s22 = smov 127  }
   0xe   : > { %s2101_s9 = smov (!%p175_p4, %s1389_s9), 1 }
   0xf   : > { %s1276_s13 = sshll.u32 %s2101_s9, 3  ;;  %s1317_s14 = sshll.u32 %s2101_s9, 5  ;;  %v1454_v14 = vshrl.u32 %v301_v13, 7 }
  0x10   : > { %s178_s17 = scalar_lea.vmem %s2066_s0, %s1276_s13  ;;  %s187_s20 = scalar_lea.vmem %s2067_s1, %s1317_s14 }
  0x11   : > { %v198_v2 = vld [vmem:[%s187_s20] sm:$0xff]   ;;  %v1281_v3 = vld [vmem:[%s187_s20 + $0x8] sm:$0xff]   ;;  %v1283_v4 = vld [vmem:[%s187_s20 + $0x10] sm:$0xff]   ;;  %v889_v15 = vmul.u32 8, %v1454_v14  ;;  %v1458_v23 = vsub.s32 2, %v1454_v14  ;;  %v1461_v24 = vsub.s32 6, %v1454_v14  ;;  %s196_s25 = scalar_lea.vmem %s2068_s2, %s1276_s13 }
  0x12   : > { %201 = vst [vmem:[#allocation2] sm:$0xff] %v198_v2   ;;  %213 = vst [vmem:[#allocation2 + $0x8] sm:$0xff] %v1281_v3   ;;  %v1285_v5 = vld [vmem:[%s187_s20 + $0x18] sm:$0xff]   ;;  %v244_v6 = vld [vmem:[%s178_s17] sm:$0xff]  ;;  %v387_v29 = vsub.s32 0, %v1454_v14  ;;  %v391_v30 = vsub.s32 4, %v1454_v14 }
  0x13   : > { %225 = vst [vmem:[#allocation2 + $0x10] sm:$0xff] %v1283_v4   ;;  %237 = vst [vmem:[#allocation2 + $0x18] sm:$0xff] %v1285_v5   ;;  %248 = vrot.lane.b32.xlu0 %v244_v6, %s1401_s21  ;;  %298 = vperm.xlu1 %1352, %v244_v6   ;;  %v1318_v7 = vtrunc.f32 %v244_v6  ;;  %v571_v39 = vsub.s32 1, %v1454_v14  ;;  %v575_v40 = vsub.s32 5, %v1454_v14  ;;  %v1492_v41 = vsub.s32 3, %v1454_v14 }
  0x15   : > { %v1319_v9 = vcvt.f32.s32 %v1318_v7 }
  0x17   : > { %1353 = vset.pattern.permute.xlu1 %v1402_v8  ;;  %vm246_vm0 = vcmp.ge.s32.totalorder %v1319_v9, 0  ;;  %v890_v16 = vadd.s32 1, %v1319_v9 }
  0x18   : > { %382 = vperm.xlu1 %1353, %v244_v6   ;;  %v673_v11 = vsel %vm246_vm0, 1, %v1402_v8 }
  0x19   : > { %v891_v17 = vadd.s32 %v890_v16, %v889_v15  ;;  %v1463_v25 = vld [vmem:[#allocation2] sm:$0xff]  ;;  %v1465_v26 = vld [vmem:[#allocation2 + $0x8] sm:$0xff] }
  0x1a   : > { %v1467_v27 = vld [vmem:[#allocation2 + $0x10] sm:$0xff]  ;;  %v1469_v28 = vld [vmem:[#allocation2 + $0x18] sm:$0xff]  ;;  %v304_v31 = vrot.slane %v1463_v25, %v1458_v23  ;;  %v308_v32 = vrot.slane %v1463_v25, %v1461_v24  ;;  %v312_v33 = vrot.slane %v1465_v26, %v1458_v23  ;;  %v316_v34 = vrot.slane %v1465_v26, %v1461_v24 }
  0x1b   : > { %v892_v18 = vsel %vm246_vm0, %v891_v17, 64  ;;  %v320_v35 = vrot.slane %v1467_v27, %v1458_v23  ;;  %v324_v36 = vrot.slane %v1467_v27, %v1461_v24  ;;  %v328_v37 = vrot.slane %v1469_v28, %v1458_v23 }
  0x1c   : > { %1355 = vset.pattern.permute.xlu1 %v1403_v10  ;;  %v332_v38 = vrot.slane %v1469_v28, %v1461_v24  ;;  %v388_v42 = vrot.slane %v1463_v25, %v387_v29  ;;  %v392_v43 = vrot.slane %v1463_v25, %v391_v30  ;;  %v396_v44 = vrot.slane %v1465_v26, %v387_v29 }
  0x1d   : > { %566 = vperm.xlu1 %1355, %v244_v6   ;;  %v400_v45 = vrot.slane %v1465_v26, %v391_v30  ;;  %v1499_v46 = vrot.slane %v304_v31, %v1458_v23  ;;  %v1502_v47 = vrot.slane %v308_v32, %v1458_v23  ;;  %v1505_v48 = vrot.slane %v312_v33, %v1458_v23 }
  0x1e   : > { %v1508_v49 = vrot.slane %v316_v34, %v1458_v23  ;;  %v1511_v50 = vrot.slane %v320_v35, %v1458_v23  ;;  %v1514_v51 = vrot.slane %v324_v36, %v1458_v23  ;;  %v1517_v52 = vrot.slane %v328_v37, %v1458_v23 }
  0x1f   : > { %v1520_v53 = vrot.slane %v332_v38, %v1458_v23  ;;  %v404_v54 = vrot.slane %v1467_v27, %v387_v29  ;;  %v408_v55 = vrot.slane %v1467_v27, %v391_v30  ;;  %v412_v56 = vrot.slane %v1469_v28, %v387_v29 }
  0x20   : > { %v416_v57 = vrot.slane %v1469_v28, %v391_v30  ;;  %v428_v58 = vrot.slane %v388_v42, %v387_v29  ;;  %v432_v59 = vrot.slane %v392_v43, %v387_v29  ;;  %v436_v60 = vrot.slane %v396_v44, %v387_v29 }
  0x21   : > { %1356 = vset.pattern.permute.xlu1 %v1404_v12  ;;  %v440_v61 = vrot.slane %v400_v45, %v387_v29  ;;  %v572_v62 = vrot.slane %v1463_v25, %v571_v39  ;;  %v576_v63 = vrot.slane %v1463_v25, %v575_v40  ;;  %v584_v1 = vrot.slane %v1465_v26, %v575_v40 }
  0x22   : > { %675 = vperm.xlu1 %1356, %v673_v11   ;;  %v588_v3 = vrot.slane %v1467_v27, %v571_v39  ;;  %v592_v4 = vrot.slane %v1467_v27, %v575_v40  ;;  %v596_v5 = vrot.slane %v1469_v28, %v571_v39  ;;  %v444_v7 = vrot.slane %v404_v54, %v387_v29 }
  0x23   : > { %v448_v9 = vrot.slane %v408_v55, %v387_v29  ;;  %v452_v10 = vrot.slane %v412_v56, %v387_v29  ;;  %v491_v11 = vsub.s32 7, %v1454_v14  ;;  %v488_v13 = vrot.slane %v1463_v25, %v1492_v41 }
  0x24   : > { %v496_v15 = vrot.slane %v1465_v26, %v1492_v41  ;;  %v504_v16 = vrot.slane %v1467_v27, %v1492_v41  ;;  %v1543_v17 = vrot.slane %v572_v62, %v571_v39  ;;  %v512_v34 = vrot.slane %v1469_v28, %v1492_v41 }
  0x25   : > { %v492_v31 = vrot.slane %v1463_v25, %v491_v11  ;;  %v500_v32 = vrot.slane %v1465_v26, %v491_v11  ;;  %v508_v33 = vrot.slane %v1467_v27, %v491_v11  ;;  %v516_v36 = vrot.slane %v1469_v28, %v491_v11 }
  0x26   : > { %902 = vperm.xlu1 %1356, %v892_v18   ;;  %v1545_v18 = vrot.slane %v576_v63, %v571_v39  ;;  %v1566_v37 = vrot.slane %v488_v13, %v1492_v41  ;;  %v1569_v38 = vrot.slane %v496_v15, %v1492_v41  ;;  %v266_v63 = vrot.slane %v1465_v26, 6 }
  0x85   : > { %v249_v19 = vpop.permute.xlu0 %248 }
  0x86   : > { %v251_v20 = vsub.f32 %v244_v6, %v249_v19 }
  0x88   : > { %253 = vrot.lane.b32.xlu0 %v251_v20, %s1405_s22 }
  0x8c   : > { %482 = vperm.xlu0 %1354, %v244_v6   ;;  %v600_v6 = vrot.slane %v1469_v28, %v575_v40 }
  0x8e   : > { %v1530_v2 = vpop.permute.xlu1 %298  ;;  %v1557_v30 = vrot.slane %v600_v6, %v571_v39  ;;  %v556_v6 = vrot.slane %v516_v36, %v1492_v41 }
  0x8f   : > { %v373_v40 = vmin.f32 %v1530_v2, %v1499_v46  ;;  %v374_v42 = vmin.f32 %v1530_v2, %v1502_v47  ;;  %v375_v43 = vmin.f32 %v1530_v2, %v1505_v48  ;;  %v376_v45 = vmin.f32 %v1530_v2, %v1508_v49 }
  0x90   : > { %1357 = vset.pattern.permute.xlu0 %v1399_v0  ;;  %v580_v0 = vrot.slane %v1465_v26, %v571_v39  ;;  %v378_v62 = vmin.f32 %v1530_v2, %v1514_v51  ;;  %v379_v46 = vmin.f32 %v1530_v2, %v1517_v52  ;;  %v1589_v47 = vrot.slane %v512_v34, %v1492_v41 }
  0x91   : > { %v380_v48 = vmin.f32 %v1530_v2, %v1520_v53  ;;  %v532_v53 = vrot.slane %v492_v31, %v1492_v41 }
  0x92   : > { %v1547_v19 = vrot.slane %v580_v0, %v571_v39 }
  0x93   : > { %v383_v35 = vpop.permute.xlu1 %382 }
  0x94   : > { %v457_v44 = vmax.f32 %v383_v35, %v428_v58  ;;  %v458_v54 = vmax.f32 %v383_v35, %v432_v59  ;;  %v459_v55 = vmax.f32 %v383_v35, %v436_v60  ;;  %v460_v56 = vmax.f32 %v383_v35, %v440_v61 }
  0x95   : > { %v461_v58 = vmax.f32 %v383_v35, %v444_v7  ;;  %v462_v49 = vmax.f32 %v383_v35, %v448_v9  ;;  %v463_v59 = vmax.f32 %v383_v35, %v452_v10 }
  0x96   : > { %v1593_v61 = vsub.f32 %v373_v40, %v457_v44  ;;  %v1597_v51 = vsub.f32 %v374_v42, %v458_v54  ;;  %v1599_v0 = vsub.f32 %v375_v43, %v459_v55  ;;  %v1601_v52 = vsub.f32 %v376_v45, %v460_v56 }
  0x97   : > { %v1611_v9 = vsub.f32 %v378_v62, %v462_v49  ;;  %v1613_v10 = vsub.f32 %v379_v46, %v463_v59 }
  0x98   : > { %v473_v13 = vmax.f32 %v1593_v61, 0.0  ;;  %v474_v31 = vmax.f32 %v1597_v51, 0.0 }
  0x99   : > { %v478_v46 = vmax.f32 %v1611_v9, 0.0 }
  0xfa   : > { %v254_v21 = vpop.permute.xlu0 %253 }
  0xfb   : > { %v256_v22 = vmul.f32 %v254_v21, %v251_v20  ;;  %v1549_v20 = vrot.slane %v584_v1, %v571_v39  ;;  %v1551_v21 = vrot.slane %v588_v3, %v571_v39  ;;  %v267_v1 = vrot.slane %v1467_v27, 6 }
  0xfc   : > { %v548_v3 = vrot.slane %v508_v33, %v1492_v41 }
  0xfd   : > { %688 = vperm.xlu0 %1357, %v256_v22   ;;  %v1553_v22 = vrot.slane %v592_v4, %v571_v39  ;;  %v268_v4 = vrot.slane %v1469_v28, 6  ;;  %v275_v33 = vsub.f32 %v1467_v27, %v267_v1 }
  0xff   : > { %v276_v40 = vsub.f32 %v1469_v28, %v268_v4  ;;  %v1289_v55 = vrot.slane %v275_v33, 9 }
 0x101   : > { %1358 = vset.pattern.permute.xlu0 %v1404_v12  ;;  %v456_v12 = vrot.slane %v416_v57, %v387_v29  ;;  %v1555_v29 = vrot.slane %v596_v5, %v571_v39  ;;  %v1572_v39 = vrot.slane %v504_v16, %v1492_v41  ;;  %v377_v57 = vmin.f32 %v1530_v2, %v1511_v50  ;;  %v567_v5 = vpop.permute.xlu1 %566 }
 0x102   : > { %v265_v50 = vrot.slane %v1463_v25, 6  ;;  %v540_v2 = vrot.slane %v500_v32, %v1492_v41  ;;  %v274_v16 = vsub.f32 %v1465_v26, %v266_v63  ;;  %v475_v32 = vmax.f32 %v1599_v0, 0.0 }
 0x103   : > { %v464_v60 = vmax.f32 %v383_v35, %v456_v12  ;;  %v1609_v7 = vsub.f32 %v377_v57, %v461_v58  ;;  %v476_v41 = vmax.f32 %v1601_v52, 0.0  ;;  %v641_v34 = vmax.f32 %v567_v5, %v1543_v17 }
 0x104   : > { %v273_v15 = vsub.f32 %v1463_v25, %v265_v50  ;;  %v642_v35 = vmax.f32 %v567_v5, %v1545_v18  ;;  %v643_v36 = vmax.f32 %v567_v5, %v1547_v19  ;;  %v644_v25 = vmax.f32 %v567_v5, %v1549_v20 }
 0x105   : > { %v1615_v12 = vsub.f32 %v380_v48, %v464_v60  ;;  %v645_v26 = vmax.f32 %v567_v5, %v1551_v21  ;;  %v646_v44 = vmax.f32 %v567_v5, %v1553_v22  ;;  %v647_v45 = vmax.f32 %v567_v5, %v1555_v29  ;;  %v1638_v29 = vpop.permute.xlu1 %675 }
 0x106   : > { %v1287_v27 = vrot.slane %v273_v15, 9  ;;  %v1288_v54 = vrot.slane %v274_v16, 9  ;;  %v648_v17 = vmax.f32 %v567_v5, %v1557_v30  ;;  %v477_v21 = vmax.f32 %v1609_v7, 0.0 }
 0x107   : > { %v483_v11 = vpop.permute.xlu0 %482  ;;  %v1290_v56 = vrot.slane %v276_v40, 9  ;;  %v479_v30 = vmax.f32 %v1613_v10, 0.0  ;;  %v480_v58 = vmax.f32 %v1615_v12, 0.0  ;;  %v295_v59 = vmul.f32 %v1289_v55, %v275_v33 }
 0x108   : > { %v557_v42 = vmin.f32 %v483_v11, %v1566_v37  ;;  %v558_v43 = vmin.f32 %v483_v11, %v532_v53  ;;  %v559_v18 = vmin.f32 %v483_v11, %v1569_v38  ;;  %v560_v19 = vmin.f32 %v483_v11, %v540_v2 }
 0x109   : > { %v561_v28 = vmin.f32 %v483_v11, %v1572_v39  ;;  %v562_v20 = vmin.f32 %v483_v11, %v548_v3  ;;  %v563_v37 = vmin.f32 %v483_v11, %v1589_v47  ;;  %v564_v57 = vmin.f32 %v483_v11, %v556_v6 }
 0x10a   : > { %v649_v22 = vsub.f32 %v557_v42, %v641_v34  ;;  %v650_v62 = vsub.f32 %v558_v43, %v642_v35  ;;  %v293_v38 = vmul.f32 %v1287_v27, %v273_v15  ;;  %v294_v48 = vmul.f32 %v1288_v54, %v274_v16 }
 0x10b   : > { %v651_v39 = vsub.f32 %v559_v18, %v643_v36  ;;  %v652_v49 = vsub.f32 %v560_v19, %v644_v25  ;;  %v653_v60 = vsub.f32 %v561_v28, %v645_v26  ;;  %v654_v61 = vsub.f32 %v562_v20, %v646_v44 }
 0x10c   : > { %vm677_vm1 = vcmp.eq.s32.totalorder %v1638_v29, 1  ;;  %v296_v47 = vmul.f32 %v1290_v56, %v276_v40  ;;  %v655_v50 = vsub.f32 %v563_v37, %v647_v45  ;;  %v656_v63 = vsub.f32 %v564_v57, %v648_v17 }
 0x10d   : > { %v657_v51 = vmax.f32 %v649_v22, 0.0  ;;  %v658_v1 = vmax.f32 %v650_v62, 0.0  ;;  %v698_v53 = vrot.slane %v293_v38, %v1458_v23  ;;  %v702_v2 = vrot.slane %v293_v38, %v1461_v24 }
 0x10e   : > { %v706_v3 = vrot.slane %v294_v48, %v1458_v23  ;;  %v710_v4 = vrot.slane %v294_v48, %v1461_v24  ;;  %v659_v5 = vmax.f32 %v651_v39, 0.0  ;;  %v660_v6 = vmax.f32 %v652_v49, 0.0 }
 0x10f   : > { %v714_v7 = vrot.slane %v295_v59, %v1458_v23  ;;  %v718_v9 = vrot.slane %v295_v59, %v1461_v24  ;;  %v661_v10 = vmax.f32 %v653_v60, 0.0  ;;  %v662_v11 = vmax.f32 %v654_v61, 0.0 }
 0x110   : > { %v722_v12 = vrot.slane %v296_v47, %v1458_v23  ;;  %v726_v15 = vrot.slane %v296_v47, %v1461_v24  ;;  %v663_v16 = vmax.f32 %v655_v50, 0.0  ;;  %v664_v33 = vmax.f32 %v656_v63, 0.0 }
 0x111   : > { %v665_v34 = vmul.f32 %v657_v51, %v473_v13  ;;  %v666_v35 = vmul.f32 %v658_v1, %v474_v31  ;;  %v738_v36 = vrot.slane %v698_v53, %v1458_v23  ;;  %v742_v40 = vrot.slane %v702_v2, %v1458_v23 }
 0x112   : > { %v746_v25 = vrot.slane %v706_v3, %v1458_v23  ;;  %v750_v26 = vrot.slane %v710_v4, %v1458_v23  ;;  %v667_v42 = vmul.f32 %v659_v5, %v475_v32  ;;  %v668_v43 = vmul.f32 %v660_v6, %v476_v41 }
 0x113   : > { %v754_v24 = vrot.slane %v714_v7, %v1458_v23  ;;  %v758_v44 = vrot.slane %v718_v9, %v1458_v23  ;;  %v669_v13 = vmul.f32 %v661_v10, %v477_v21  ;;  %v670_v31 = vmul.f32 %v662_v11, %v478_v46 }
 0x114   : > { %v762_v45 = vrot.slane %v722_v12, %v1458_v23  ;;  %v766_v27 = vrot.slane %v726_v15, %v1458_v23  ;;  %v671_v54 = vmul.f32 %v663_v16, %v479_v30  ;;  %v672_v17 = vmul.f32 %v664_v33, %v480_v58 }
 0x115   : > { %v1666_v18 = vsel %vm677_vm1, %v665_v34, 0.0  ;;  %v1670_v0 = vsel %vm677_vm1, %v666_v35, 0.0  ;;  %v1674_v28 = vsel %vm677_vm1, %v667_v42, 0.0  ;;  %v1678_v23 = vsel %vm677_vm1, %v668_v43, 0.0 }
 0x116   : > { %v1685_v62 = vsel %vm677_vm1, %v669_v13, 0.0  ;;  %v1690_v38 = vsel %vm677_vm1, %v670_v31, 0.0  ;;  %v1695_v58 = vsel %vm677_vm1, %v671_v54, 0.0  ;;  %v1700_v49 = vsel %vm677_vm1, %v672_v17, 0.0 }
 0x117   : > { %vm815_vm2 = vcmp.gt.f32.partialorder %v1666_v18, 0.0  ;;  %vm816_vm3 = vcmp.gt.f32.partialorder %v1670_v0, 0.0  ;;  %vm817_vm4 = vcmp.gt.f32.partialorder %v1674_v28, 0.0  ;;  %vm818_vm5 = vcmp.gt.f32.partialorder %v1678_v23, 0.0 }
 0x118   : > { %vm819_vm6 = vcmp.gt.f32.partialorder %v1685_v62, 0.0  ;;  %vm820_vm7 = vcmp.gt.f32.partialorder %v1690_v38, 0.0  ;;  %vm821_vm8 = vcmp.gt.f32.partialorder %v1695_v58, 0.0  ;;  %v1406_v16 = vmov 1966171168  }
 0x119   : > { %v1711_v33 = vunpack.c.l.s4 %v1406_v16  ;;  %vm822_vm9 = vcmp.gt.f32.partialorder %v1700_v49, 0.0 }
 0x178   : > { %v689_v52 = vpop.permute.xlu0 %688 }
 0x179   : > { %v767_v32 = vadd.f32 %v738_v36, %v689_v52  ;;  %v768_v41 = vadd.f32 %v742_v40, %v689_v52  ;;  %v769_v19 = vadd.f32 %v746_v25, %v689_v52  ;;  %v770_v55 = vadd.f32 %v750_v26, %v689_v52 }
 0x17a   : > { %v771_v20 = vadd.f32 %v754_v24, %v689_v52  ;;  %v772_v21 = vadd.f32 %v758_v44, %v689_v52  ;;  %v773_v56 = vadd.f32 %v762_v45, %v689_v52  ;;  %v774_v46 = vadd.f32 %v766_v27, %v689_v52 }
 0x17b   : > { %v775_v37 = vsub.f32 %v767_v32, %v1666_v18  ;;  %v776_v57 = vsub.f32 %v768_v41, %v1670_v0  ;;  %v777_v22 = vsub.f32 %v769_v19, %v1674_v28  ;;  %v778_v30 = vsub.f32 %v770_v55, %v1678_v23 }
 0x17c   : > { %v779_v48 = vsub.f32 %v771_v20, %v1685_v62  ;;  %v780_v39 = vsub.f32 %v772_v21, %v1690_v38  ;;  %v781_v59 = vsub.f32 %v773_v56, %v1695_v58  ;;  %v782_v60 = vsub.f32 %v774_v46, %v1700_v49 }
 0x17d   : > { %1359 = vrcp.f32 %v775_v37 }
 0x17e   : > { %1361 = vrcp.f32 %v776_v57 }
 0x17f   : > { %1363 = vrcp.f32 %v777_v22 }
 0x180   : > { %1365 = vrcp.f32 %v778_v30 }
 0x181   : > { %1367 = vrcp.f32 %v779_v48 }
 0x182   : > { %1369 = vrcp.f32 %v780_v39 }
 0x183   : > { %1371 = vrcp.f32 %v781_v59 }
 0x184   : > { %1373 = vrcp.f32 %v782_v60 }
 0x18a   : > { %v1360_v61 = vpop.eup %1359 }
 0x18b   : > { %v1362_v47 = vpop.eup %1361  ;;  %v791_v50 = vmul.f32 %v1360_v61, %v775_v37 }
 0x18c   : > { %v1364_v63 = vpop.eup %1363  ;;  %v792_v29 = vmul.f32 %v1362_v47, %v776_v57 }
 0x18d   : > { %v1366_v51 = vpop.eup %1365  ;;  %v793_v1 = vmul.f32 %v1364_v63, %v777_v22  ;;  %v799_v53 = vsub.f32 2.0, %v791_v50 }
 0x18e   : > { %v1368_v2 = vpop.eup %1367  ;;  %v794_v3 = vmul.f32 %v1366_v51, %v778_v30  ;;  %v800_v4 = vsub.f32 2.0, %v792_v29 }
 0x18f   : > { %v1370_v5 = vpop.eup %1369  ;;  %v795_v6 = vmul.f32 %v1368_v2, %v779_v48  ;;  %v801_v7 = vsub.f32 2.0, %v793_v1  ;;  %v807_v9 = vmul.f32 %v1360_v61, %v799_v53 }
 0x190   : > { %v1372_v10 = vpop.eup %1371  ;;  %v796_v11 = vmul.f32 %v1370_v5, %v780_v39  ;;  %v802_v12 = vsub.f32 2.0, %v794_v3  ;;  %v808_v15 = vmul.f32 %v1362_v47, %v800_v4 }
 0x191   : > { %v1374_v34 = vpop.eup %1373  ;;  %v797_v35 = vmul.f32 %v1372_v10, %v781_v59  ;;  %v803_v36 = vsub.f32 2.0, %v795_v6  ;;  %v809_v40 = vmul.f32 %v1364_v63, %v801_v7  ;;  %v823_v25 = vmul.f32 %v807_v9, %v1666_v18 }
 0x192   : > { %v798_v26 = vmul.f32 %v1374_v34, %v782_v60  ;;  %v804_v42 = vsub.f32 2.0, %v796_v11  ;;  %v810_v43 = vmul.f32 %v1366_v51, %v802_v12  ;;  %v824_v24 = vmul.f32 %v808_v15, %v1670_v0 }
 0x193   : > { %v805_v44 = vsub.f32 2.0, %v797_v35  ;;  %v811_v13 = vmul.f32 %v1368_v2, %v803_v36  ;;  %v825_v31 = vmul.f32 %v809_v40, %v1674_v28  ;;  %v1719_v45 = vsel %vm815_vm2, %v823_v25, 0.0 }
 0x194   : > { %v806_v27 = vsub.f32 2.0, %v798_v26  ;;  %v812_v54 = vmul.f32 %v1370_v5, %v804_v42  ;;  %v826_v17 = vmul.f32 %v810_v43, %v1678_v23  ;;  %v1724_v52 = vsel %vm816_vm3, %v824_v24, 0.0 }
 0x195   : > { %v813_v32 = vmul.f32 %v1372_v10, %v805_v44  ;;  %v827_v41 = vmul.f32 %v811_v13, %v1685_v62  ;;  %v1729_v19 = vsel %vm817_vm4, %v825_v31, 0.0  ;;  %v839_v55 = vrot.slane %v1719_v45, 4 }
 0x196   : > { %v814_v18 = vmul.f32 %v1374_v34, %v806_v27  ;;  %v828_v20 = vmul.f32 %v812_v54, %v1690_v38  ;;  %v1735_v21 = vsel %vm818_vm5, %v826_v17, 0.0  ;;  %v845_v0 = vrot.slane %v1724_v52, 4 }
 0x197   : > { %v829_v56 = vmul.f32 %v813_v32, %v1695_v58  ;;  %v1741_v37 = vsel %vm819_vm6, %v827_v41, 0.0  ;;  %v840_v28 = vmax.f32 %v1719_v45, %v839_v55  ;;  %v851_v57 = vrot.slane %v1729_v19, 4 }
 0x198   : > { %v830_v22 = vmul.f32 %v814_v18, %v1700_v49  ;;  %v1748_v46 = vsel %vm820_vm7, %v828_v20, 0.0  ;;  %v846_v23 = vmax.f32 %v1724_v52, %v845_v0  ;;  %v857_v30 = vrot.slane %v1735_v21, 4 }
 0x199   : > { %v1754_v48 = vsel %vm821_vm8, %v829_v56, 0.0  ;;  %v841_v62 = vrot.slane %v840_v28, 2  ;;  %v852_v39 = vmax.f32 %v1729_v19, %v851_v57  ;;  %v863_v59 = vrot.slane %v1741_v37, 4 }
 0x19a   : > { %v1760_v60 = vsel %vm822_vm9, %v830_v22, 0.0  ;;  %v847_v38 = vrot.slane %v846_v23, 2  ;;  %v858_v61 = vmax.f32 %v1735_v21, %v857_v30  ;;  %v869_v47 = vrot.slane %v1748_v46, 4 }
 0x19b   : > { %v842_v50 = vmax.f32 %v840_v28, %v841_v62  ;;  %v853_v63 = vrot.slane %v852_v39, 2  ;;  %v864_v58 = vmax.f32 %v1741_v37, %v863_v59  ;;  %v875_v29 = vrot.slane %v1754_v48, 4 }
 0x19c   : > { %v848_v51 = vmax.f32 %v846_v23, %v847_v38  ;;  %v859_v1 = vrot.slane %v858_v61, 2  ;;  %v870_v53 = vmax.f32 %v1748_v46, %v869_v47  ;;  %v881_v2 = vrot.slane %v1760_v60, 4 }
 0x19d   : > { %v843_v49 = vrot.slane %v842_v50, 1  ;;  %v854_v3 = vmax.f32 %v852_v39, %v853_v63  ;;  %v865_v4 = vrot.slane %v864_v58, 2  ;;  %v876_v5 = vmax.f32 %v1754_v48, %v875_v29 }
 0x19e   : > { %v849_v6 = vrot.slane %v848_v51, 1  ;;  %v860_v7 = vmax.f32 %v858_v61, %v859_v1  ;;  %v871_v9 = vrot.slane %v870_v53, 2  ;;  %v882_v10 = vmax.f32 %v1760_v60, %v881_v2 }
 0x19f   : > { %v855_v11 = vrot.slane %v854_v3, 1  ;;  %v866_v12 = vmax.f32 %v864_v58, %v865_v4  ;;  %v877_v15 = vrot.slane %v876_v5, 2  ;;  %v1134_v36 = vunpack.c.0.s8 %v1711_v33 }
 0x1a0   : > { %v861_v16 = vrot.slane %v860_v7, 1  ;;  %v872_v34 = vmax.f32 %v870_v53, %v871_v9  ;;  %v883_v35 = vrot.slane %v882_v10, 2  ;;  %v1771_v40 = vmax.f32 %v842_v50, %v843_v49  ;;  %v903_v53 = vpop.permute.xlu1 %902 }
 0x1a1   : > { %v1773_v25 = vmax.f32 %v848_v51, %v849_v6  ;;  %v867_v26 = vrot.slane %v866_v12, 1  ;;  %v878_v42 = vmax.f32 %v876_v5, %v877_v15  ;;  %v1775_v43 = vmax.f32 %v854_v3, %v855_v11 }
 0x1a2   : > { %v1777_v24 = vmax.f32 %v860_v7, %v861_v16  ;;  %v873_v44 = vrot.slane %v872_v34, 1  ;;  %v884_v13 = vmax.f32 %v882_v10, %v883_v35  ;;  %vm1032_vm10 = vcmp.ge.f32.partialorder %v1771_v40, 0.5 }
 0x1a3   : > { %v1779_v31 = vmax.f32 %v866_v12, %v867_v26  ;;  %v879_v27 = vrot.slane %v878_v42, 1  ;;  %v1787_v33 = vsub.s32 %v1134_v36, %v1454_v14  ;;  %vm1033_vm11 = vcmp.ge.f32.partialorder %v1773_v25, 0.5 }
 0x1a4   : > { %v1781_v54 = vmax.f32 %v872_v34, %v873_v44  ;;  %v885_v17 = vrot.slane %v884_v13, 1  ;;  %vm2074_vm12 = vcmp.ge.f32.partialorder %v1775_v43, 0.5  ;;  %vm2073_vm13 = vcmp.ge.f32.partialorder %v1777_v24, 0.5 }
 0x1a5   : > { %v1783_v32 = vmax.f32 %v878_v42, %v879_v27  ;;  %vm893_vm14 = vcmp.eq.f32.partialorder %v1719_v45, %v1771_v40  ;;  %vm2072_vm15 = vcmp.ge.f32.partialorder %v1779_v31, 0.5  ;;  %vm894_vm2 = vcmp.eq.f32.partialorder %v1724_v52, %v1773_v25 }
 0x1a6   : > { %v1789_v41 = vmax.f32 %v884_v13, %v885_v17  ;;  %vm2071_vm0 = vcmp.ge.f32.partialorder %v1781_v54, 0.5  ;;  %vm895_vm3 = vcmp.eq.f32.partialorder %v1729_v19, %v1775_v43  ;;  %vm896_vm4 = vcmp.eq.f32.partialorder %v1735_v21, %v1777_v24 }
 0x1a7   : > { %vm2070_vm1 = vcmp.ge.f32.partialorder %v1783_v32, 0.5  ;;  %v1809_v14 = vsel %vm1032_vm10, 1, %v1402_v8  ;;  %v1814_v55 = vsel %vm1033_vm11, 1, %v1402_v8  ;;  %v1819_v18 = vsel %vm2074_vm12, 1, %v1402_v8 }
 0x1a8   : > { %vm2069_vm5 = vcmp.ge.f32.partialorder %v1789_v41, 0.5  ;;  %v1824_v20 = vsel %vm2073_vm13, 1, %v1402_v8  ;;  %v1829_v0 = vsel %vm2072_vm15, 1, %v1402_v8  ;;  %v1834_v56 = vsel %vm2071_vm0, 1, %v1402_v8 }
 0x1a9   : > { %v1839_v28 = vsel %vm2070_vm1, 1, %v1402_v8  ;;  %v1844_v57 = vsel %vm2069_vm5, 1, %v1402_v8  ;;  %vm897_vm6 = vcmp.eq.f32.partialorder %v1741_v37, %v1779_v31  ;;  %vm898_vm7 = vcmp.eq.f32.partialorder %v1748_v46, %v1781_v54 }
 0x1aa   : > { %vm899_vm8 = vcmp.eq.f32.partialorder %v1754_v48, %v1783_v32  ;;  %vm900_vm9 = vcmp.eq.f32.partialorder %v1760_v60, %v1789_v41  ;;  %v1855_v22 = vadd.s32 1, %v1809_v14  ;;  %v1858_v23 = vadd.s32 1, %v1814_v55 }
 0x1ab   : > { %v1861_v8 = vadd.s32 1, %v1819_v18  ;;  %v1864_v30 = vadd.s32 1, %v1824_v20  ;;  %v1867_v62 = vadd.s32 1, %v1829_v0  ;;  %v1870_v39 = vadd.s32 1, %v1834_v56 }
 0x1ac   : > { %v1873_v59 = vadd.s32 1, %v1839_v28  ;;  %v1876_v38 = vadd.s32 1, %v1844_v57  ;;  %v1096_v61 = vshll.u32 %v1855_v22, 4  ;;  %v1097_v47 = vshll.u32 %v1858_v23, 4 }
 0x1ad   : > { %v1098_v50 = vshll.u32 %v1861_v8, 4  ;;  %v904_v2 = vsel %vm893_vm14, %v903_v53, 64  ;;  %v905_v49 = vsel %vm894_vm2, %v903_v53, 64  ;;  %v906_v3 = vsel %vm895_vm3, %v903_v53, 64 }
 0x1ae   : > { %v907_v4 = vsel %vm896_vm4, %v903_v53, 64  ;;  %v908_v5 = vsel %vm897_vm6, %v903_v53, 64  ;;  %v909_v45 = vsel %vm898_vm7, %v903_v53, 64  ;;  %v910_v52 = vsel %vm899_vm8, %v903_v53, 64 }
 0x1af   : > { %v911_v19 = vsel %vm900_vm9, %v903_v53, 64  ;;  %v912_v6 = vrot.slane %v904_v2, 4  ;;  %v921_v7 = vrot.slane %v905_v49, 4  ;;  %v930_v21 = vrot.slane %v906_v3, 4 }
 0x1b0   : > { %v939_v9 = vrot.slane %v907_v4, 4  ;;  %v948_v10 = vrot.slane %v908_v5, 4  ;;  %v957_v11 = vrot.slane %v909_v45, 4  ;;  %v966_v37 = vrot.slane %v910_v52, 4 }
 0x1b1   : > { %v975_v12 = vrot.slane %v911_v19, 4  ;;  %vm913_vm14 = vcmp.lt.s32.totalorder %v904_v2, %v912_v6  ;;  %vm922_vm2 = vcmp.lt.s32.totalorder %v905_v49, %v921_v7  ;;  %vm931_vm3 = vcmp.lt.s32.totalorder %v906_v3, %v930_v21 }
 0x1b2   : > { %vm940_vm4 = vcmp.lt.s32.totalorder %v907_v4, %v939_v9  ;;  %v914_v46 = vsel %vm913_vm14, %v904_v2, %v912_v6  ;;  %v923_v15 = vsel %vm922_vm2, %v905_v49, %v921_v7  ;;  %v932_v48 = vsel %vm931_vm3, %v906_v3, %v930_v21 }
 0x1b3   : > { %v941_v16 = vsel %vm940_vm4, %v907_v4, %v939_v9  ;;  %v915_v34 = vrot.slane %v914_v46, 2  ;;  %v924_v35 = vrot.slane %v923_v15, 2  ;;  %v933_v60 = vrot.slane %v932_v48, 2 }
 0x1b4   : > { %v942_v36 = vrot.slane %v941_v16, 2  ;;  %vm1910_vm6 = vcmp.lt.s32.totalorder %v908_v5, %v948_v10  ;;  %vm1914_vm7 = vcmp.lt.s32.totalorder %v909_v45, %v957_v11  ;;  %vm1918_vm8 = vcmp.lt.s32.totalorder %v910_v52, %v966_v37 }
 0x1b5   : > { %vm1922_vm9 = vcmp.lt.s32.totalorder %v911_v19, %v975_v12  ;;  %vm916_vm14 = vcmp.lt.s32.totalorder %v914_v46, %v915_v34  ;;  %vm925_vm2 = vcmp.lt.s32.totalorder %v923_v15, %v924_v35  ;;  %vm934_vm3 = vcmp.lt.s32.totalorder %v932_v48, %v933_v60 }
 0x1b6   : > { %vm943_vm4 = vcmp.lt.s32.totalorder %v941_v16, %v942_v36  ;;  %v917_v27 = vsel %vm916_vm14, %v914_v46, %v915_v34  ;;  %v926_v17 = vsel %vm925_vm2, %v923_v15, %v924_v35  ;;  %v935_v53 = vsel %vm934_vm3, %v932_v48, %v933_v60 }
 0x1b7   : > { %v944_v2 = vsel %vm943_vm4, %v941_v16, %v942_v36  ;;  %v918_v49 = vrot.slane %v917_v27, 1  ;;  %v927_v3 = vrot.slane %v926_v17, 1  ;;  %v936_v4 = vrot.slane %v935_v53, 1 }
 0x1b8   : > { %v945_v6 = vrot.slane %v944_v2, 1  ;;  %v950_v7 = vsel %vm1910_vm6, %v908_v5, %v948_v10  ;;  %v959_v21 = vsel %vm1914_vm7, %v909_v45, %v957_v11  ;;  %v968_v9 = vsel %vm1918_vm8, %v910_v52, %v966_v37 }
 0x1b9   : > { %v977_v1 = vsel %vm1922_vm9, %v911_v19, %v975_v12  ;;  %vm919_vm14 = vcmp.lt.s32.totalorder %v917_v27, %v918_v49  ;;  %vm928_vm2 = vcmp.lt.s32.totalorder %v926_v17, %v927_v3  ;;  %vm937_vm3 = vcmp.lt.s32.totalorder %v935_v53, %v936_v4 }
 0x1ba   : > { %vm946_vm4 = vcmp.lt.s32.totalorder %v944_v2, %v945_v6  ;;  %v1934_v46 = vsel %vm919_vm14, %v917_v27, %v918_v49  ;;  %v1936_v15 = vsel %vm928_vm2, %v926_v17, %v927_v3  ;;  %v1938_v48 = vsel %vm937_vm3, %v935_v53, %v936_v4 }
 0x1bb   : > { %v1940_v5 = vsel %vm946_vm4, %v944_v2, %v945_v6  ;;  %v951_v10 = vrot.slane %v950_v7, 2  ;;  %v960_v45 = vrot.slane %v959_v21, 2  ;;  %v969_v11 = vrot.slane %v968_v9, 2 }
 0x1bc   : > { %v978_v16 = vrot.slane %v977_v1, 2  ;;  %vm984_vm6 = vcmp.lt.s32.totalorder %v1934_v46, 64  ;;  %vm985_vm7 = vcmp.lt.s32.totalorder %v1936_v15, 64  ;;  %vm986_vm8 = vcmp.lt.s32.totalorder %v1938_v48, 64 }
 0x1bd   : > { %vm987_vm9 = vcmp.lt.s32.totalorder %v1940_v5, 64  ;;  %vm952_vm14 = vcmp.lt.s32.totalorder %v950_v7, %v951_v10  ;;  %vm961_vm5 = vcmp.lt.s32.totalorder %v959_v21, %v960_v45  ;;  %vm970_vm2 = vcmp.lt.s32.totalorder %v968_v9, %v969_v11 }
 0x1be   : > { %vm979_vm1 = vcmp.lt.s32.totalorder %v977_v1, %v978_v16  ;;  %v953_v52 = vsel %vm952_vm14, %v950_v7, %v951_v10  ;;  %v962_v19 = vsel %vm961_vm5, %v959_v21, %v960_v45  ;;  %v971_v37 = vsel %vm970_vm2, %v968_v9, %v969_v11 }
 0x1bf   : > { %v980_v12 = vsel %vm979_vm1, %v977_v1, %v978_v16  ;;  %v954_v34 = vrot.slane %v953_v52, 1  ;;  %v963_v35 = vrot.slane %v962_v19, 1  ;;  %v972_v60 = vrot.slane %v971_v37, 1 }
 0x1c0   : > { %v981_v36 = vrot.slane %v980_v12, 1  ;;  %v992_v26 = vshra.s32 %v1934_v46, 3  ;;  %v993_v42 = vshra.s32 %v1936_v15, 3  ;;  %v994_v44 = vshra.s32 %v1938_v48, 3 }
 0x1c1   : > { %v995_v13 = vshra.s32 %v1940_v5, 3  ;;  %vm955_vm3 = vcmp.lt.s32.totalorder %v953_v52, %v954_v34  ;;  %vm964_vm4 = vcmp.lt.s32.totalorder %v962_v19, %v963_v35  ;;  %vm973_vm0 = vcmp.lt.s32.totalorder %v971_v37, %v972_v60 }
 0x1c2   : > { %vm982_vm15 = vcmp.lt.s32.totalorder %v980_v12, %v981_v36  ;;  %v956_v27 = vsel %vm955_vm3, %v953_v52, %v954_v34  ;;  %v965_v17 = vsel %vm964_vm4, %v962_v19, %v963_v35  ;;  %v974_v53 = vsel %vm973_vm0, %v971_v37, %v972_v60 }
 0x1c3   : > { %v983_v1 = vsel %vm982_vm15, %v980_v12, %v981_v36  ;;  %vm988_vm1 = vcmp.lt.s32.totalorder %v956_v27, 64  ;;  %vm989_vm5 = vcmp.lt.s32.totalorder %v965_v17, 64  ;;  %vm990_vm14 = vcmp.lt.s32.totalorder %v974_v53, 64 }
 0x1c4   : > { %vm991_vm2 = vcmp.lt.s32.totalorder %v983_v1, 64  ;;  %v996_v2 = vshra.s32 %v956_v27, 3  ;;  %v997_v49 = vshra.s32 %v965_v17, 3  ;;  %v998_v3 = vshra.s32 %v974_v53, 3 }
 0x1c5   : > { %v999_v4 = vshra.s32 %v983_v1, 3  ;;  %v1952_v6 = vsel %vm984_vm6, %v992_v26, 0  ;;  %v1956_v7 = vsel %vm985_vm7, %v993_v42, 0  ;;  %v1960_v21 = vsel %vm986_vm8, %v994_v44, 0 }
 0x1c6   : > { %v1964_v9 = vsel %vm987_vm9, %v995_v13, 0  ;;  %vm1066_vm3 = vcmp.eq.s32.totalorder %v1819_v18, 4294967295  ;;  %vm1067_vm4 = vcmp.eq.s32.totalorder %v1824_v20, 4294967295  ;;  %v1004_v10 = vsel %vm988_vm1, %v996_v2, 0 }
 0x1c7   : > { %v1005_v45 = vsel %vm989_vm5, %v997_v49, 0  ;;  %v1006_v11 = vsel %vm990_vm14, %v998_v3, 0  ;;  %v1007_v16 = vsel %vm991_vm2, %v999_v4, 0  ;;  %vm1068_vm13 = vcmp.eq.s32.totalorder %v1829_v0, 4294967295 }
 0x1c8   : > { %vm1069_vm12 = vcmp.eq.s32.totalorder %v1834_v56, 4294967295  ;;  %vm1070_vm15 = vcmp.eq.s32.totalorder %v1839_v28, 4294967295  ;;  %vm1071_vm0 = vcmp.eq.s32.totalorder %v1844_v57, 4294967295  ;;  %v1008_v52 = vand.u32 7, %v1934_v46 }
 0x1c9   : > { %v1009_v19 = vand.u32 7, %v1936_v15  ;;  %v1010_v37 = vand.u32 7, %v1938_v48  ;;  %v1011_v12 = vand.u32 7, %v1940_v5  ;;  %v1012_v34 = vand.u32 7, %v956_v27 }
 0x1ca   : > { %v1013_v35 = vand.u32 7, %v965_v17  ;;  %v1014_v60 = vand.u32 7, %v974_v53  ;;  %v1015_v36 = vand.u32 7, %v983_v1  ;;  %v1291_v26 = vadd.s32 4294967295, %v1008_v52 }
 0x1cb   : > { %v1292_v42 = vadd.s32 4294967295, %v1009_v19  ;;  %v1293_v44 = vadd.s32 4294967295, %v1010_v37  ;;  %v1294_v13 = vadd.s32 4294967295, %v1011_v12  ;;  %v1295_v2 = vadd.s32 4294967295, %v1012_v34 }
 0x1cc   : > { %v1296_v49 = vadd.s32 4294967295, %v1013_v35  ;;  %v1297_v3 = vadd.s32 4294967295, %v1014_v60  ;;  %v1298_v4 = vadd.s32 4294967295, %v1015_v36  ;;  %v1024_v51 = vsel %vm984_vm6, %v1291_v26, 0 }
 0x1cd   : > { %v1025_v29 = vsel %vm985_vm7, %v1292_v42, 0  ;;  %v1026_v58 = vsel %vm986_vm8, %v1293_v44, 0  ;;  %v1027_v63 = vsel %vm987_vm9, %v1294_v13, 0  ;;  %v1028_v52 = vsel %vm988_vm1, %v1295_v2, 0 }
 0x1ce   : > { %v1029_v19 = vsel %vm989_vm5, %v1296_v49, 0  ;;  %v1030_v37 = vsel %vm990_vm14, %v1297_v3, 0  ;;  %v1031_v12 = vsel %vm991_vm2, %v1298_v4, 0  ;;  %v1307_v46 = vsel %vm1032_vm10, %v1024_v51, 3 }
 0x1cf   : > { %v1308_v15 = vsel %vm1033_vm11, %v1025_v29, 3  ;;  %vm2083_vm6 = vcmp.ge.f32.partialorder %v1775_v43, 0.5  ;;  %vm2084_vm7 = vcmp.ge.f32.partialorder %v1777_v24, 0.5  ;;  %vm2085_vm8 = vcmp.ge.f32.partialorder %v1779_v31, 0.5 }
 0x1d0   : > { %v1309_v48 = vsel %vm2083_vm6, %v1026_v58, 3  ;;  %v1310_v5 = vsel %vm2084_vm7, %v1027_v63, 3  ;;  %v1311_v27 = vsel %vm2085_vm8, %v1028_v52, 3  ;;  %vm2086_vm9 = vcmp.ge.f32.partialorder %v1781_v54, 0.5 }
 0x1d1   : > { %v1312_v17 = vsel %vm2086_vm9, %v1029_v19, 3  ;;  %vm2087_vm1 = vcmp.ge.f32.partialorder %v1783_v32, 0.5  ;;  %vm2088_vm10 = vcmp.ge.f32.partialorder %v1789_v41, 0.5  ;;  %vm2089_vm11 = vcmp.eq.s32.totalorder %v1809_v14, 4294967295 }
 0x1d2   : > { %v1313_v53 = vsel %vm2087_vm1, %v1030_v37, 3  ;;  %v1314_v40 = vsel %vm2088_vm10, %v1031_v12, 3  ;;  %v1072_v25 = vsel %vm2089_vm11, 4294967295, %v1307_v46  ;;  %vm2090_vm5 = vcmp.eq.s32.totalorder %v1814_v55, 4294967295 }
 0x1d3   : > { %v1073_v43 = vsel %vm2090_vm5, 4294967295, %v1308_v15  ;;  %v1074_v24 = vsel %vm1066_vm3, 4294967295, %v1309_v48  ;;  %v1075_v31 = vsel %vm1067_vm4, 4294967295, %v1310_v5  ;;  %v1076_v54 = vsel %vm1068_vm13, 4294967295, %v1311_v27 }
 0x1d4   : > { %v1077_v32 = vsel %vm1069_vm12, 4294967295, %v1312_v17  ;;  %v1078_v41 = vsel %vm1070_vm15, 4294967295, %v1313_v53  ;;  %v1079_v14 = vsel %vm1071_vm0, 4294967295, %v1314_v40  ;;  %v1080_v55 = vshll.u32 %v1952_v6, 6 }
 0x1d5   : > { %v1081_v18 = vshll.u32 %v1956_v7, 6  ;;  %v1082_v63 = vshll.u32 %v1960_v21, 6  ;;  %v1083_v20 = vshll.u32 %v1964_v9, 6  ;;  %v1084_v58 = vshll.u32 %v1004_v10, 6 }
 0x1d6   : > { %v1085_v0 = vshll.u32 %v1005_v45, 6  ;;  %v1086_v29 = vshll.u32 %v1006_v11, 6  ;;  %v1087_v51 = vshll.u32 %v1007_v16, 6  ;;  %v1104_v56 = vor.u32 %v1096_v61, %v1080_v55 }
 0x1d7   : > { %v1105_v28 = vor.u32 %v1097_v47, %v1081_v18  ;;  %v1106_v57 = vor.u32 %v1098_v50, %v1082_v63  ;;  %v2091_v1 = vshll.u32 %v1864_v30, 4  ;;  %v2092_v7 = vshll.u32 %v1867_v62, 4 }
 0x1d8   : > { %v2093_v9 = vshll.u32 %v1870_v39, 4  ;;  %v2094_v45 = vshll.u32 %v1873_v59, 4  ;;  %v2095_v22 = vshll.u32 %v1876_v38, 4  ;;  %v1112_v23 = vadd.s32 1, %v1072_v25 }
 0x1d9   : > { %v1107_v6 = vor.u32 %v2091_v1, %v1083_v20  ;;  %v1108_v21 = vor.u32 %v2092_v7, %v1084_v58  ;;  %v1113_v47 = vadd.s32 1, %v1073_v43  ;;  %v1114_v16 = vadd.s32 1, %v1074_v24 }
 0x1da   : > { %v1109_v10 = vor.u32 %v2093_v9, %v1085_v0  ;;  %v1110_v11 = vor.u32 %v2094_v45, %v1086_v29  ;;  %v1111_v61 = vor.u32 %v2095_v22, %v1087_v51  ;;  %v1115_v8 = vadd.s32 1, %v1075_v31 }
 0x1db   : > { %v1116_v50 = vadd.s32 1, %v1076_v54  ;;  %v1117_v34 = vadd.s32 1, %v1077_v32  ;;  %v1118_v30 = vadd.s32 1, %v1078_v41  ;;  %v1119_v35 = vadd.s32 1, %v1079_v14 }
 0x1dc   : > { %v1120_v60 = vor.u32 %v1112_v23, %v1104_v56  ;;  %v1121_v62 = vor.u32 %v1113_v47, %v1105_v28  ;;  %v1122_v36 = vor.u32 %v1114_v16, %v1106_v57  ;;  %v1123_v26 = vor.u32 %v1115_v8, %v1107_v6 }
 0x1dd   : > { %v1124_v39 = vor.u32 %v1116_v50, %v1108_v21  ;;  %v1125_v42 = vor.u32 %v1117_v34, %v1109_v10  ;;  %v1126_v59 = vor.u32 %v1118_v30, %v1110_v11  ;;  %v1127_v44 = vor.u32 %v1119_v35, %v1111_v61 }
 0x1de   : > { %v1128_v13 = vcombine.low %v1120_v60, %v1121_v62  ;;  %v1129_v38 = vcombine.low %v1122_v36, %v1123_v26 }
 0x1df   : > { %v1130_v2 = vcombine.low %v1124_v39, %v1125_v42  ;;  %v1131_v49 = vcombine.low %v1126_v59, %v1127_v44 }
 0x1e0   : > { %v1138_v3 = vrot.slane %v1128_v13, %v1787_v33  ;;  %v1145_v4 = vrot.slane %v1129_v38, %v1787_v33 }
 0x1e1   : > { %v1152_v52 = vrot.slane %v1130_v2, %v1787_v33  ;;  %v1159_v19 = vrot.slane %v1131_v49, %v1787_v33 }
 0x1e2   : > { %v1160_v37 = vcombine.low %v1138_v3, %v1145_v4 }
 0x1e3   : > { %v1161_v12 = vcombine.low %v1152_v52, %v1159_v19 }
 0x1e4   : > { %v1168_v46 = vrot.slane %v1160_v37, %v1787_v33 }
 0x1e5   : > { %v1175_v15 = vrot.slane %v1161_v12, %v1787_v33 }
 0x1e7   : > { %v1176_v48 = vcombine.low %v1168_v46, %v1175_v15 }
 0x1e9   : > { %1177 = vst [vmem:[%s196_s25] sm:$0xff] %v1176_v48 }
 0x1ea PF: > { %s12_s11 = sadd.s32 1, %s1397_s11   ;;  %s2096_s9 = smov %s1393_s10 }
 0x1eb   : > { %p9_p5 = scmp.ge.s32.totalorder %s12_s11, 4   ;;  %s2097_s10 = smov %s2099_s12 }
 0x1ed   :  { %11 = sbr.rel (!%p9_p5) target bundleno = 2 (0x2), region = 75 }

</bundles_post_ra>
